<compile_context>
chip_gen: v6e
topology: v6e:2x2x1
jax: 0.10.0
libtpu: 0.0.40
codegen_flags: <defaults>
</compile_context>

<pallas_src>
import functools

import numpy as np

import jax
import jax.numpy as jnp
from jax import lax
from jax.experimental import pallas as pl
from jax.experimental.pallas import tpu as pltpu


def _prototype_kernel(l_smem_ref, l_vmem_ref, x_ref, cupd_ref, cother_ref,
                      new_center_ref, psq_ref, pcnt_ref,
                      *, momentum, use_mxu):
    """Per-C-block: segment-mean, EMA + L2-normalize, per-block loss partials."""
    bi = pl.program_id(0)
    block_c, feat = cupd_ref.shape
    n = x_ref.shape[0]
    base = bi * block_c

    x = x_ref[...].astype(jnp.float32)                     # (N, D)
    c_upd = cupd_ref[...].astype(jnp.float32)              # (block_c, D) modality being updated
    c_other = cother_ref[...].astype(jnp.float32)          # (block_c, D) other modality

    if use_mxu:
        # Large (block_c, D) accumulator and/or large batch: the one-hot matmul
        # on the MXU avoids spilling a multi-hundred-vreg accumulator through
        # the vector-store slot (perf review rec #1).
        labels = l_vmem_ref[...]                            # (1, N) int32
        cls_ids = base + lax.broadcasted_iota(jnp.int32, (block_c, n), 0)
        onehot = (cls_ids == labels).astype(jnp.float32)    # (block_c, N)
        counts = jnp.sum(onehot, axis=1, keepdims=True)     # (block_c, 1)
        # TODO(synk): optionally cast onehot/x to bf16 here (keep f32 accumulate)
        # for v6e's native-bf16 MXU once the tolerance budget allows it.
        sums = jnp.dot(onehot, x, preferred_element_type=jnp.float32)
    else:
        # Tiny resident block: masked accumulate on the VPU.  The class iota is
        # hoisted and compared against a SCALAR label from SMEM, so there is no
        # per-iteration lane broadcast of a one-hot column (perf review rec #2);
        # only a cheap 8-sublane broadcast of the sample row remains.
        cls_full = base + lax.broadcasted_iota(jnp.int32, (block_c, feat), 0)
        cls_col = base + lax.broadcasted_iota(jnp.int32, (block_c, 1), 0)
        sums = jnp.zeros((block_c, feat), jnp.float32)
        counts = jnp.zeros((block_c, 1), jnp.float32)
        for i in range(n):                                  # n is static & small on this path
            lbl = l_smem_ref[i]                             # scalar label from SMEM
            sums = sums + jnp.where(cls_full == lbl, x[i:i + 1, :], 0.0)
            counts = counts + (cls_col == lbl).astype(jnp.float32)

    present = counts > 0.0                                  # (block_c, 1)
    safe_counts = jnp.where(present, counts, 1.0)
    center_tmp = sums / safe_counts                         # exact divide (rec: drop exact-recip refinement)

    # EMA update + row L2 normalization (rsqrt-multiply); classes not present in
    # the batch keep their previous prototype row.  (Padded rows of a ragged
    # last block are never "present" and their writes are masked by Pallas.)
    upd = c_upd * momentum + center_tmp * (1.0 - momentum)
    norm_sq = jnp.sum(upd * upd, axis=1, keepdims=True)
    # tiny guard only kicks in where PyTorch would produce NaN/Inf (zero rows)
    upd = upd * lax.rsqrt(jnp.maximum(norm_sq, 1e-30))
    new_center = jnp.where(present, upd, c_upd)
    new_center_ref[...] = new_center.astype(new_center_ref.dtype)

    # align_loss(alpha=2) per-block partials; reduced in the JAX wrapper so the
    # grid axis carries no serial accumulator and can run "parallel" (v7x 2-TC).
    diff = new_center - c_other
    sq = jnp.sum(diff * diff, axis=1, keepdims=True)        # (block_c, 1)
    psq_ref[...] = jnp.sum(jnp.where(present, sq, 0.0)).reshape(1, 1, 1)
    pcnt_ref[...] = jnp.sum(present.astype(jnp.float32)).reshape(1, 1, 1)


def _pick_block_c(num_classes, feat_dim, n_samples):
    """C-tile size.

    Small tables: one resident block (full-dim block, exempt from the (8,128)
    rule).  Large tables: the biggest sublane-aligned tile that keeps the three
    double-buffered (block_c, D) f32 streams plus x inside a ~24 MiB VMEM
    budget (fits v5e/v6e/v7x scoped limits; the last block may be ragged).
    """
    if num_classes <= 1024:
        return num_classes
    budget = 24 * 1024 * 1024
    per_row = 3 * 2 * feat_dim * 4          # c_upd, c_other, out; double-buffered; f32
    cap = (budget - 4 * n_samples * feat_dim * 4) // per_row
    cap = int(max(128, min(2048, cap)))
    cap -= cap % 8                          # sublane-aligned second-to-last block dim
    return min(num_classes, cap)


@functools.partial(jax.jit, static_argnames=("momentum",), donate_argnums=(2,))
def _prototype_update(x, labels, c_upd, c_other, momentum):
    """Core update for one modality. Returns (loss, new_center). `c_upd` is donated."""
    N, D = x.shape
    C = c_upd.shape[0]

    block_c = _pick_block_c(C, D, N)
    n_blocks = pl.cdiv(C, block_c)
    # MXU whenever the (block_c, D) accumulator would spill the vreg file, or
    # the batch is big enough that an unrolled VPU loop is unreasonable.
    use_mxu = (block_c * D * 4 > 128 * 1024) or (N > 64)

    labels_smem = labels.reshape(N).astype(jnp.int32)       # scalar-prefetch (SMEM)
    labels_vmem = labels_smem.reshape(1, N)                  # VMEM tile for MXU path
    x32 = x.astype(jnp.float32)

    kernel = functools.partial(_prototype_kernel,
                               momentum=float(momentum), use_mxu=use_mxu)

    # live VMEM ~= 3 streams x 2 buffers x (block_c, D) f32 + x + labels + slack
    est = 3 * 2 * block_c * D * 4 + 4 * N * D * 4 + (1 << 16)
    vmem_limit = int(min(64 * 1024 * 1024, max(2 * est, 16 * 1024 * 1024)))

    new_center, psq, pcnt = pl.pallas_call(
        kernel,
        out_shape=(
            jax.ShapeDtypeStruct((C, D), c_upd.dtype),
            jax.ShapeDtypeStruct((n_blocks, 1, 1), jnp.float32),
            jax.ShapeDtypeStruct((n_blocks, 1, 1), jnp.float32),
        ),
        grid_spec=pltpu.PrefetchScalarGridSpec(
            num_scalar_prefetch=1,                           # labels -> SMEM
            grid=(n_blocks,),
            in_specs=[
                pl.BlockSpec((1, N), lambda i, lbl: (0, 0)),         # labels (VMEM, full)
                pl.BlockSpec((N, D), lambda i, lbl: (0, 0)),         # x (full each step)
                pl.BlockSpec((block_c, D), lambda i, lbl: (i, 0)),   # prototypes to update
                pl.BlockSpec((block_c, D), lambda i, lbl: (i, 0)),   # other-modality prototypes
            ],
            out_specs=(
                pl.BlockSpec((block_c, D), lambda i, lbl: (i, 0)),   # updated prototypes
                pl.BlockSpec((1, 1, 1), lambda i, lbl: (i, 0, 0)),   # per-block loss numerator
                pl.BlockSpec((1, 1, 1), lambda i, lbl: (i, 0, 0)),   # per-block present count
            ),
        ),
        # operand order incl. scalar prefetch: (labels_smem, labels_vmem, x, c_upd, c_other)
        input_output_aliases={3: 0},        # prototype table updated in place
        compiler_params=pltpu.CompilerParams(
            dimension_semantics=("parallel",),
            vmem_limit_bytes=vmem_limit),
    )(labels_smem, labels_vmem, x32, c_upd, c_other)

    loss = jnp.sum(psq) / jnp.sum(pcnt)      # tiny (n_blocks,) reduction in XLA
    return loss, new_center


def prototype_forward(x, l, center_img, center_skt, momentum=0.9, modality="img"):
    """Functional equivalent of Prototype.forward.

    Returns (loss, new_center_img, new_center_skt).

    NOTE: the prototype table of the updated modality is DONATED to the kernel
    (true in-place update); do not reuse that input array afterwards.
    """
    if modality == "img":
        loss, new_img = _prototype_update(x, l, center_img, center_skt, momentum=momentum)
        return loss, new_img, center_skt
    loss, new_skt = _prototype_update(x, l, center_skt, center_img, momentum=momentum)
    return loss, center_img, new_skt


def _reference_numpy(x, l, c_upd, c_other, momentum=0.9):
    """Plain-numpy re-implementation of the PyTorch forward (updates c_upd)."""
    x = np.asarray(x, np.float32)
    l = np.asarray(l)
    c_upd = np.array(c_upd, np.float32, copy=True)
    c_other = np.asarray(c_other, np.float32)
    classes, inv, counts = np.unique(l, return_inverse=True, return_counts=True)
    center_tmp = np.zeros((len(classes), x.shape[1]), np.float32)
    for i, idx in enumerate(inv):
        center_tmp[idx] += x[i]
    center_tmp = center_tmp / counts[:, None]
    upd = c_upd[classes] * momentum + center_tmp * (1.0 - momentum)
    upd = upd / np.linalg.norm(upd, axis=1, keepdims=True)
    c_upd[classes] = upd
    diff = c_upd[classes] - c_other[classes]
    loss = (np.linalg.norm(diff, axis=1) ** 2).mean()
    return loss, c_upd


if __name__ == "__main__":
    key = jax.random.PRNGKey(0)
    k1, k2, k3, k4 = jax.random.split(key, 4)

    N = 8        # batch size
    C = 16       # number of prototype classes
    D = 384      # feature dim (module default dim=384)
    momentum = 0.9

    # Deterministic "buffers" (row-normalized prototypes) and batch inputs.
    center_img = jax.random.normal(k1, (C, D), jnp.float32)
    center_img = center_img / jnp.linalg.norm(center_img, axis=1, keepdims=True)
    center_skt = jax.random.normal(k2, (C, D), jnp.float32)
    center_skt = center_skt / jnp.linalg.norm(center_skt, axis=1, keepdims=True)
    x = jax.random.normal(k3, (N, D), jnp.float32)
    l = jax.random.randint(k4, (N,), 0, C, jnp.int32)

    # Host copies BEFORE any kernel call: the updated table is donated in-place.
    x_h, l_h = np.asarray(x), np.asarray(l)
    img_h, skt_h = np.asarray(center_img), np.asarray(center_skt)

    # modality='img': center_img is donated (consumed) by this call.
    loss_i, new_img, _ = prototype_forward(
        x, l, center_img, center_skt, momentum=momentum, modality="img")
    # center_img was donated above -> re-materialize it; center_skt (only read
    # so far) is donated by this second call.
    loss_s, _, new_skt = prototype_forward(
        x, l, jnp.asarray(img_h), center_skt, momentum=momentum, modality="skt")
    jax.block_until_ready((loss_i, new_img, loss_s, new_skt))

    ref_loss_i, ref_img = _reference_numpy(x_h, l_h, img_h, skt_h, momentum)
    ref_loss_s, ref_skt = _reference_numpy(x_h, l_h, skt_h, img_h, momentum)

    assert np.allclose(float(loss_i), ref_loss_i, rtol=1e-4, atol=1e-5), (loss_i, ref_loss_i)
    assert np.allclose(np.asarray(new_img), ref_img, rtol=1e-4, atol=2e-5)
    assert np.allclose(float(loss_s), ref_loss_s, rtol=1e-4, atol=1e-5), (loss_s, ref_loss_s)
    assert np.allclose(np.asarray(new_skt), ref_skt, rtol=1e-4, atol=2e-5)

    print("KERNEL_OK")
</pallas_src>

<mosaic_0001>
module attributes {stable_mosaic.version = 11 : i64} {
  func.func @_prototype_kernel(%arg0: i32, %arg1: memref<8xi32, #tpu.memory_space<smem>>, %arg2: memref<1x8xi32, #tpu.memory_space<vmem>>, %arg3: memref<8x384xf32, #tpu.memory_space<vmem>>, %arg4: memref<16x384xf32, #tpu.memory_space<vmem>>, %arg5: memref<16x384xf32, #tpu.memory_space<vmem>>, %arg6: memref<16x384xf32, #tpu.memory_space<vmem>>, %arg7: memref<1x1x1xf32, #tpu.memory_space<vmem>>, %arg8: memref<1x1x1xf32, #tpu.memory_space<vmem>>) attributes {dimension_semantics = [#tpu.dimension_semantics<parallel>], iteration_bounds = array<i64: 1>, scalar_prefetch = 1 : i64, scratch_operands = 0 : i64, tpu.core_type = #tpu.core_type<tc>, window_params = [{pipeline_mode = #tpu.pipeline_mode<synchronous>, transform_indices = @transform_0, window_bounds = array<i64: 1, 8>}, {pipeline_mode = #tpu.pipeline_mode<synchronous>, transform_indices = @transform_1, window_bounds = array<i64: 8, 384>}, {transform_indices = @transform_2, window_bounds = array<i64: 16, 384>}, {transform_indices = @transform_3, window_bounds = array<i64: 16, 384>}, {transform_indices = @transform_4, window_bounds = array<i64: 16, 384>}, {transform_indices = @transform_5, window_bounds = array<i64: 1, 1, 1>}, {transform_indices = @transform_6, window_bounds = array<i64: 1, 1, 1>}]} {
    %c16_i32 = arith.constant 16 : i32
    %0 = arith.muli %arg0, %c16_i32 : i32
    %c0 = arith.constant 0 : index
    %c0_0 = arith.constant 0 : index
    %1 = vector.load %arg3[%c0, %c0_0] : memref<8x384xf32, #tpu.memory_space<vmem>>, vector<8x384xf32>
    %c0_1 = arith.constant 0 : index
    %c0_2 = arith.constant 0 : index
    %2 = vector.load %arg4[%c0_1, %c0_2] : memref<16x384xf32, #tpu.memory_space<vmem>>, vector<16x384xf32>
    %c0_3 = arith.constant 0 : index
    %c0_4 = arith.constant 0 : index
    %3 = vector.load %arg5[%c0_3, %c0_4] : memref<16x384xf32, #tpu.memory_space<vmem>>, vector<16x384xf32>
    %4 = tpu.iota {dimensions = array<i32: 0>} : vector<16x384xi32>
    %5 = vector.broadcast %0 : i32 to vector<16x384xi32>
    %6 = arith.addi %5, %4 : vector<16x384xi32>
    %7 = tpu.iota {dimensions = array<i32: 0>} : vector<16x1xi32>
    %8 = vector.broadcast %0 : i32 to vector<16x1xi32>
    %9 = arith.addi %8, %7 : vector<16x1xi32>
    %cst = arith.constant 0.000000e+00 : f32
    %10 = vector.broadcast %cst : f32 to vector<16x384xf32>
    %cst_5 = arith.constant 0.000000e+00 : f32
    %11 = vector.broadcast %cst_5 : f32 to vector<16x1xf32>
    %c0_6 = arith.constant 0 : index
    %12 = memref.load %arg1[%c0_6] : memref<8xi32, #tpu.memory_space<smem>>
    %13 = vector.broadcast %12 : i32 to vector<16x384xi32>
    %14 = arith.cmpi eq, %6, %13 : vector<16x384xi32>
    %15 = vector.extract_strided_slice %1 {offsets = [0, 0], sizes = [1, 384], strides = [1, 1]} : vector<8x384xf32> to vector<1x384xf32>
    %cst_7 = arith.constant 0.000000e+00 : f32
    %16 = vector.shape_cast %15 : vector<1x384xf32> to vector<1x384xf32>
    %17 = vector.broadcast %16 : vector<1x384xf32> to vector<16x384xf32>
    %18 = vector.broadcast %cst_7 : f32 to vector<16x384xf32>
    %19 = arith.select %14, %17, %18 : vector<16x384xi1>, vector<16x384xf32>
    %20 = arith.addf %10, %19 : vector<16x384xf32>
    %21 = vector.broadcast %12 : i32 to vector<16x1xi32>
    %22 = arith.cmpi eq, %9, %21 : vector<16x1xi32>
    %23 = arith.extui %22 : vector<16x1xi1> to vector<16x1xi32>
    %24 = arith.sitofp %23 : vector<16x1xi32> to vector<16x1xf32>
    %25 = arith.addf %11, %24 : vector<16x1xf32>
    %c1 = arith.constant 1 : index
    %26 = memref.load %arg1[%c1] : memref<8xi32, #tpu.memory_space<smem>>
    %27 = vector.broadcast %26 : i32 to vector<16x384xi32>
    %28 = arith.cmpi eq, %6, %27 : vector<16x384xi32>
    %29 = vector.extract_strided_slice %1 {offsets = [1, 0], sizes = [1, 384], strides = [1, 1]} : vector<8x384xf32> to vector<1x384xf32>
    %cst_8 = arith.constant 0.000000e+00 : f32
    %30 = vector.shape_cast %29 : vector<1x384xf32> to vector<1x384xf32>
    %31 = vector.broadcast %30 : vector<1x384xf32> to vector<16x384xf32>
    %32 = vector.broadcast %cst_8 : f32 to vector<16x384xf32>
    %33 = arith.select %28, %31, %32 : vector<16x384xi1>, vector<16x384xf32>
    %34 = arith.addf %20, %33 : vector<16x384xf32>
    %35 = vector.broadcast %26 : i32 to vector<16x1xi32>
    %36 = arith.cmpi eq, %9, %35 : vector<16x1xi32>
    %37 = arith.extui %36 : vector<16x1xi1> to vector<16x1xi32>
    %38 = arith.sitofp %37 : vector<16x1xi32> to vector<16x1xf32>
    %39 = arith.addf %25, %38 : vector<16x1xf32>
    %c2 = arith.constant 2 : index
    %40 = memref.load %arg1[%c2] : memref<8xi32, #tpu.memory_space<smem>>
    %41 = vector.broadcast %40 : i32 to vector<16x384xi32>
    %42 = arith.cmpi eq, %6, %41 : vector<16x384xi32>
    %43 = vector.extract_strided_slice %1 {offsets = [2, 0], sizes = [1, 384], strides = [1, 1]} : vector<8x384xf32> to vector<1x384xf32>
    %cst_9 = arith.constant 0.000000e+00 : f32
    %44 = vector.shape_cast %43 : vector<1x384xf32> to vector<1x384xf32>
    %45 = vector.broadcast %44 : vector<1x384xf32> to vector<16x384xf32>
    %46 = vector.broadcast %cst_9 : f32 to vector<16x384xf32>
    %47 = arith.select %42, %45, %46 : vector<16x384xi1>, vector<16x384xf32>
    %48 = arith.addf %34, %47 : vector<16x384xf32>
    %49 = vector.broadcast %40 : i32 to vector<16x1xi32>
    %50 = arith.cmpi eq, %9, %49 : vector<16x1xi32>
    %51 = arith.extui %50 : vector<16x1xi1> to vector<16x1xi32>
    %52 = arith.sitofp %51 : vector<16x1xi32> to vector<16x1xf32>
    %53 = arith.addf %39, %52 : vector<16x1xf32>
    %c3 = arith.constant 3 : index
    %54 = memref.load %arg1[%c3] : memref<8xi32, #tpu.memory_space<smem>>
    %55 = vector.broadcast %54 : i32 to vector<16x384xi32>
    %56 = arith.cmpi eq, %6, %55 : vector<16x384xi32>
    %57 = vector.extract_strided_slice %1 {offsets = [3, 0], sizes = [1, 384], strides = [1, 1]} : vector<8x384xf32> to vector<1x384xf32>
    %cst_10 = arith.constant 0.000000e+00 : f32
    %58 = vector.shape_cast %57 : vector<1x384xf32> to vector<1x384xf32>
    %59 = vector.broadcast %58 : vector<1x384xf32> to vector<16x384xf32>
    %60 = vector.broadcast %cst_10 : f32 to vector<16x384xf32>
    %61 = arith.select %56, %59, %60 : vector<16x384xi1>, vector<16x384xf32>
    %62 = arith.addf %48, %61 : vector<16x384xf32>
    %63 = vector.broadcast %54 : i32 to vector<16x1xi32>
    %64 = arith.cmpi eq, %9, %63 : vector<16x1xi32>
    %65 = arith.extui %64 : vector<16x1xi1> to vector<16x1xi32>
    %66 = arith.sitofp %65 : vector<16x1xi32> to vector<16x1xf32>
    %67 = arith.addf %53, %66 : vector<16x1xf32>
    %c4 = arith.constant 4 : index
    %68 = memref.load %arg1[%c4] : memref<8xi32, #tpu.memory_space<smem>>
    %69 = vector.broadcast %68 : i32 to vector<16x384xi32>
    %70 = arith.cmpi eq, %6, %69 : vector<16x384xi32>
    %71 = vector.extract_strided_slice %1 {offsets = [4, 0], sizes = [1, 384], strides = [1, 1]} : vector<8x384xf32> to vector<1x384xf32>
    %cst_11 = arith.constant 0.000000e+00 : f32
    %72 = vector.shape_cast %71 : vector<1x384xf32> to vector<1x384xf32>
    %73 = vector.broadcast %72 : vector<1x384xf32> to vector<16x384xf32>
    %74 = vector.broadcast %cst_11 : f32 to vector<16x384xf32>
    %75 = arith.select %70, %73, %74 : vector<16x384xi1>, vector<16x384xf32>
    %76 = arith.addf %62, %75 : vector<16x384xf32>
    %77 = vector.broadcast %68 : i32 to vector<16x1xi32>
    %78 = arith.cmpi eq, %9, %77 : vector<16x1xi32>
    %79 = arith.extui %78 : vector<16x1xi1> to vector<16x1xi32>
    %80 = arith.sitofp %79 : vector<16x1xi32> to vector<16x1xf32>
    %81 = arith.addf %67, %80 : vector<16x1xf32>
    %c5 = arith.constant 5 : index
    %82 = memref.load %arg1[%c5] : memref<8xi32, #tpu.memory_space<smem>>
    %83 = vector.broadcast %82 : i32 to vector<16x384xi32>
    %84 = arith.cmpi eq, %6, %83 : vector<16x384xi32>
    %85 = vector.extract_strided_slice %1 {offsets = [5, 0], sizes = [1, 384], strides = [1, 1]} : vector<8x384xf32> to vector<1x384xf32>
    %cst_12 = arith.constant 0.000000e+00 : f32
    %86 = vector.shape_cast %85 : vector<1x384xf32> to vector<1x384xf32>
    %87 = vector.broadcast %86 : vector<1x384xf32> to vector<16x384xf32>
    %88 = vector.broadcast %cst_12 : f32 to vector<16x384xf32>
    %89 = arith.select %84, %87, %88 : vector<16x384xi1>, vector<16x384xf32>
    %90 = arith.addf %76, %89 : vector<16x384xf32>
    %91 = vector.broadcast %82 : i32 to vector<16x1xi32>
    %92 = arith.cmpi eq, %9, %91 : vector<16x1xi32>
    %93 = arith.extui %92 : vector<16x1xi1> to vector<16x1xi32>
    %94 = arith.sitofp %93 : vector<16x1xi32> to vector<16x1xf32>
    %95 = arith.addf %81, %94 : vector<16x1xf32>
    %c6 = arith.constant 6 : index
    %96 = memref.load %arg1[%c6] : memref<8xi32, #tpu.memory_space<smem>>
    %97 = vector.broadcast %96 : i32 to vector<16x384xi32>
    %98 = arith.cmpi eq, %6, %97 : vector<16x384xi32>
    %99 = vector.extract_strided_slice %1 {offsets = [6, 0], sizes = [1, 384], strides = [1, 1]} : vector<8x384xf32> to vector<1x384xf32>
    %cst_13 = arith.constant 0.000000e+00 : f32
    %100 = vector.shape_cast %99 : vector<1x384xf32> to vector<1x384xf32>
    %101 = vector.broadcast %100 : vector<1x384xf32> to vector<16x384xf32>
    %102 = vector.broadcast %cst_13 : f32 to vector<16x384xf32>
    %103 = arith.select %98, %101, %102 : vector<16x384xi1>, vector<16x384xf32>
    %104 = arith.addf %90, %103 : vector<16x384xf32>
    %105 = vector.broadcast %96 : i32 to vector<16x1xi32>
    %106 = arith.cmpi eq, %9, %105 : vector<16x1xi32>
    %107 = arith.extui %106 : vector<16x1xi1> to vector<16x1xi32>
    %108 = arith.sitofp %107 : vector<16x1xi32> to vector<16x1xf32>
    %109 = arith.addf %95, %108 : vector<16x1xf32>
    %c7 = arith.constant 7 : index
    %110 = memref.load %arg1[%c7] : memref<8xi32, #tpu.memory_space<smem>>
    %111 = vector.broadcast %110 : i32 to vector<16x384xi32>
    %112 = arith.cmpi eq, %6, %111 : vector<16x384xi32>
    %113 = vector.extract_strided_slice %1 {offsets = [7, 0], sizes = [1, 384], strides = [1, 1]} : vector<8x384xf32> to vector<1x384xf32>
    %cst_14 = arith.constant 0.000000e+00 : f32
    %114 = vector.shape_cast %113 : vector<1x384xf32> to vector<1x384xf32>
    %115 = vector.broadcast %114 : vector<1x384xf32> to vector<16x384xf32>
    %116 = vector.broadcast %cst_14 : f32 to vector<16x384xf32>
    %117 = arith.select %112, %115, %116 : vector<16x384xi1>, vector<16x384xf32>
    %118 = arith.addf %104, %117 : vector<16x384xf32>
    %119 = vector.broadcast %110 : i32 to vector<16x1xi32>
    %120 = arith.cmpi eq, %9, %119 : vector<16x1xi32>
    %121 = arith.extui %120 : vector<16x1xi1> to vector<16x1xi32>
    %122 = arith.sitofp %121 : vector<16x1xi32> to vector<16x1xf32>
    %123 = arith.addf %109, %122 : vector<16x1xf32>
    %cst_15 = arith.constant 0.000000e+00 : f32
    %124 = vector.broadcast %cst_15 : f32 to vector<16x1xf32>
    %125 = arith.cmpf ogt, %123, %124 : vector<16x1xf32>
    %cst_16 = arith.constant 1.000000e+00 : f32
    %126 = vector.broadcast %cst_16 : f32 to vector<16x1xf32>
    %127 = arith.select %125, %123, %126 : vector<16x1xi1>, vector<16x1xf32>
    %128 = vector.broadcast %127 : vector<16x1xf32> to vector<16x384xf32>
    %129 = arith.divf %118, %128 : vector<16x384xf32>
    %cst_17 = arith.constant 0.899999976 : f32
    %130 = vector.broadcast %cst_17 : f32 to vector<16x384xf32>
    %131 = arith.mulf %2, %130 : vector<16x384xf32>
    %cst_18 = arith.constant 1.000000e-01 : f32
    %132 = vector.broadcast %cst_18 : f32 to vector<16x384xf32>
    %133 = arith.mulf %129, %132 : vector<16x384xf32>
    %134 = arith.addf %131, %133 : vector<16x384xf32>
    %135 = arith.mulf %134, %134 : vector<16x384xf32>
    %cst_19 = arith.constant dense<0.000000e+00> : vector<16xf32>
    %136 = vector.multi_reduction <add>, %135, %cst_19 [1] : vector<16x384xf32> to vector<16xf32>
    %137 = vector.shape_cast %136 : vector<16xf32> to vector<16x1xf32>
    %cst_20 = arith.constant 1.000000e-30 : f32
    %138 = vector.broadcast %cst_20 : f32 to vector<16x1xf32>
    %139 = arith.maximumf %137, %138 : vector<16x1xf32>
    %140 = math.rsqrt %139 : vector<16x1xf32>
    %141 = vector.broadcast %140 : vector<16x1xf32> to vector<16x384xf32>
    %142 = arith.mulf %134, %141 : vector<16x384xf32>
    %143 = vector.shape_cast %125 : vector<16x1xi1> to vector<16x1xi1>
    %144 = vector.broadcast %143 : vector<16x1xi1> to vector<16x384xi1>
    %145 = arith.select %144, %142, %2 : vector<16x384xi1>, vector<16x384xf32>
    %c0_21 = arith.constant 0 : index
    %c0_22 = arith.constant 0 : index
    %146 = vector.load %arg6[%c0_21, %c0_22] : memref<16x384xf32, #tpu.memory_space<vmem>>, vector<16x384xf32>
    tpu.vector_store %arg6[%c0_21, %c0_22], %145 {strides = array<i32>} : memref<16x384xf32, #tpu.memory_space<vmem>>, vector<16x384xf32>,
    %147 = arith.subf %145, %3 : vector<16x384xf32>
    %148 = arith.mulf %147, %147 : vector<16x384xf32>
    %cst_23 = arith.constant dense<0.000000e+00> : vector<16xf32>
    %149 = vector.multi_reduction <add>, %148, %cst_23 [1] : vector<16x384xf32> to vector<16xf32>
    %150 = vector.shape_cast %149 : vector<16xf32> to vector<16x1xf32>
    %cst_24 = arith.constant 0.000000e+00 : f32
    %151 = vector.broadcast %cst_24 : f32 to vector<16x1xf32>
    %152 = arith.select %125, %150, %151 : vector<16x1xi1>, vector<16x1xf32>
    %153 = vector.shape_cast %152 : vector<16x1xf32> to vector<1x16x1xf32>
    %cst_25 = arith.constant dense<0.000000e+00> : vector<1xf32>
    %154 = vector.multi_reduction <add>, %153, %cst_25 [1, 2] : vector<1x16x1xf32> to vector<1xf32>
    %155 = vector.shape_cast %154 : vector<1xf32> to vector<1x1x1xf32>
    %156 = vector.extract %155[0, 0, 0] : f32 from vector<1x1x1xf32>
    %157 = vector.broadcast %156 : f32 to vector<1x1x1xf32>
    %c0_26 = arith.constant 0 : index
    %c0_27 = arith.constant 0 : index
    %c0_28 = arith.constant 0 : index
    %158 = vector.load %arg7[%c0_26, %c0_27, %c0_28] : memref<1x1x1xf32, #tpu.memory_space<vmem>>, vector<1x1x1xf32>
    tpu.vector_store %arg7[%c0_26, %c0_27, %c0_28], %157 {strides = array<i32>} : memref<1x1x1xf32, #tpu.memory_space<vmem>>, vector<1x1x1xf32>,
    %159 = arith.extui %125 : vector<16x1xi1> to vector<16x1xi32>
    %160 = arith.sitofp %159 : vector<16x1xi32> to vector<16x1xf32>
    %161 = vector.shape_cast %160 : vector<16x1xf32> to vector<1x16x1xf32>
    %cst_29 = arith.constant dense<0.000000e+00> : vector<1xf32>
    %162 = vector.multi_reduction <add>, %161, %cst_29 [1, 2] : vector<1x16x1xf32> to vector<1xf32>
    %163 = vector.shape_cast %162 : vector<1xf32> to vector<1x1x1xf32>
    %164 = vector.extract %163[0, 0, 0] : f32 from vector<1x1x1xf32>
    %165 = vector.broadcast %164 : f32 to vector<1x1x1xf32>
    %c0_30 = arith.constant 0 : index
    %c0_31 = arith.constant 0 : index
    %c0_32 = arith.constant 0 : index
    %166 = vector.load %arg8[%c0_30, %c0_31, %c0_32] : memref<1x1x1xf32, #tpu.memory_space<vmem>>, vector<1x1x1xf32>
    tpu.vector_store %arg8[%c0_30, %c0_31, %c0_32], %165 {strides = array<i32>} : memref<1x1x1xf32, #tpu.memory_space<vmem>>, vector<1x1x1xf32>,
    return
  }
  func.func @transform_0(%arg0: i32, %arg1: memref<8xi32, #tpu.memory_space<smem>>) -> (i32, i32) {
    %c0_i32 = arith.constant 0 : i32
    %c0_i32_0 = arith.constant 0 : i32
    %c0_i32_1 = arith.constant 0 : i32
    return %c0_i32, %c0_i32_0 : i32, i32
  }
  func.func @transform_1(%arg0: i32, %arg1: memref<8xi32, #tpu.memory_space<smem>>) -> (i32, i32) {
    %c0_i32 = arith.constant 0 : i32
    %c0_i32_0 = arith.constant 0 : i32
    %c0_i32_1 = arith.constant 0 : i32
    return %c0_i32, %c0_i32_0 : i32, i32
  }
  func.func @transform_2(%arg0: i32, %arg1: memref<8xi32, #tpu.memory_space<smem>>) -> (i32, i32) {
    %c0_i32 = arith.constant 0 : i32
    %c0_i32_0 = arith.constant 0 : i32
    return %arg0, %c0_i32 : i32, i32
  }
  func.func @transform_3(%arg0: i32, %arg1: memref<8xi32, #tpu.memory_space<smem>>) -> (i32, i32) {
    %c0_i32 = arith.constant 0 : i32
    %c0_i32_0 = arith.constant 0 : i32
    return %arg0, %c0_i32 : i32, i32
  }
  func.func @transform_4(%arg0: i32, %arg1: memref<8xi32, #tpu.memory_space<smem>>) -> (i32, i32) {
    %c0_i32 = arith.constant 0 : i32
    %c0_i32_0 = arith.constant 0 : i32
    return %arg0, %c0_i32 : i32, i32
  }
  func.func @transform_5(%arg0: i32, %arg1: memref<8xi32, #tpu.memory_space<smem>>) -> (i32, i32, i32) {
    %c0_i32 = arith.constant 0 : i32
    %c0_i32_0 = arith.constant 0 : i32
    %c0_i32_1 = arith.constant 0 : i32
    return %arg0, %c0_i32, %c0_i32_0 : i32, i32, i32
  }
  func.func @transform_6(%arg0: i32, %arg1: memref<8xi32, #tpu.memory_space<smem>>) -> (i32, i32, i32) {
    %c0_i32 = arith.constant 0 : i32
    %c0_i32_0 = arith.constant 0 : i32
    %c0_i32_1 = arith.constant 0 : i32
    return %arg0, %c0_i32, %c0_i32_0 : i32, i32, i32
  }
}

</mosaic_0001>

<bundles_post_ra>
// kernel: _prototype_update.1
= control target key start
LH: loop header
LB: loop body
LE: loop exit
PB: predicated region body
PF: predicated region fallthrough
CT: control target
= control target key end

     0   :  { %s1245_s0 = inlined_call_operand.vmem [shape: s32[8], index: 0, kind: input, shape index: {}, may-alias: {0,1}]   ;;  %s1246_s1 = inlined_call_operand.vmem [shape: s32[1,8], index: 1, kind: input, shape index: {}, may-alias: {0,1}]   ;;  %s1247_s2 = inlined_call_operand.hbm [shape: f32[8,384], index: 2, kind: input, shape index: {}]   ;;  %s1248_s3 = inlined_call_operand.hbm [shape: f32[16,384], index: 3, kind: input, shape index: {}, may-alias: {3,5}]   ;;  %s1249_s4 = inlined_call_operand.hbm [shape: f32[16,384], index: 4, kind: input, shape index: {}]   ;;  %s1250_s5 = inlined_call_operand.hbm [shape: f32[16,384], index: 5, kind: output, shape index: {0}, may-alias: {3,5}]   ;;  %s1251_s6 = inlined_call_operand.hbm [shape: f32[1,1,1], index: 6, kind: output, shape index: {1}]   ;;  %s1252_s7 = inlined_call_operand.hbm [shape: f32[1,1,1], index: 7, kind: output, shape index: {2}]  }
   0x1   :  { %s13_s25 = sshll.u32 %s1245_s0, 4  ;;  %s14_s25 = int_to_ptr.vmem [resolvable:$true] %s13_s25 }
   0x2   :  { %s578_s26 = scalar_lea.vmem %s14_s25, 16  ;;  %p583_p1 = scmp.lt.s32.totalorder %s14_s25, %s14_s25 }
   0x3   :  { %p579_p0 = scmp.ne.s32.totalorder %s14_s25, %s578_s26  ;;  %p584_p2 = scmp.lt.s32.totalorder %s578_s26, %s578_s26 }
   0x5   :  { %p585_p3 = por %p584_p2, %p583_p1 }
   0x7   :  { %p586_p4 = pnand %p585_p3, %p579_p0 }
   0x9   :  { %589 = shalt.err (!%p586_p4)  }
   0xa   :  { %s720_s27 = smov [#allocation3]  }
   0xb   :  { %16 = dma.vmem_to_smem %s14_s25, 16, %s720_s27, [#allocation2] }
   0xc   :  { %710 = dma.done.wait [#allocation2], 16 }
   0xd   :  { %711 = vsyncadd [#allocation2], 4294967280 }
   0xe   :  { %18 = sfence }
   0xf   :  { %19 = vsyncpa [#allocation5], 0 }
  0x10   :  { %20 = vsyncpa [#allocation8], 0 }
  0x11   :  { %21 = vsyncpa [#allocation6], 0 }
  0x12   :  { %22 = vsyncpa [#allocation12], 0  ;;  %s721_s28 = smov [#allocation7]  }
  0x13   :  { %s40_s29 = sshll.u32 %s721_s28, 4  ;;  %s41_s29 = int_to_ptr.vmem [resolvable:$true] %s40_s29 }
  0x14   :  { %s598_s0 = scalar_lea.vmem %s41_s29, 768  ;;  %p603_p6 = scmp.lt.s32.totalorder %s41_s29, %s41_s29 }
  0x15   :  { %p599_p5 = scmp.ne.s32.totalorder %s41_s29, %s598_s0  ;;  %p604_p7 = scmp.lt.s32.totalorder %s598_s0, %s598_s0 }
  0x17   :  { %p605_p8 = por %p604_p7, %p603_p6 }
  0x19   :  { %p606_p9 = pnand %p605_p8, %p599_p5 }
  0x1b   :  { %609 = shalt.err (!%p606_p9)
}
  0x1c   :  { %s722_s30 = smov 384   ;;  %s723_s8 = smov 24  }
  0x1d   :  { %46 = dma.hbm_to_vmem [thread:$0]  %s1248_s3, 768, %s41_s29, [#allocation8], %s722_s30, %s722_s30, %s723_s8  }
  0x1e   :  { %s724_s11 = smov [#allocation4]   ;;  %s725_s13 = smov [#allocation9]  }
  0x1f   :  { %s31_s12 = sshll.u32 %s724_s11, 4  ;;  %s52_s14 = sshll.u32 %s725_s13, 4  ;;  %s32_s12 = int_to_ptr.vmem [resolvable:$true] %s31_s12  ;;  %s53_s14 = int_to_ptr.vmem [resolvable:$true] %s52_s14 }
  0x20   :  { %s618_s15 = scalar_lea.vmem %s32_s12, 384  ;;  %p623_p11 = scmp.lt.s32.totalorder %s32_s12, %s32_s12 }
  0x21   :  { %p619_p10 = scmp.ne.s32.totalorder %s32_s12, %s618_s15  ;;  %p624_p12 = scmp.lt.s32.totalorder %s618_s15, %s618_s15 }
  0x23   :  { %p625_p13 = por %p624_p12, %p623_p11 }
  0x25   :  { %p626_p0 = pnand %p625_p13, %p619_p10 }
  0x27   :  { %629 = shalt.err (!%p626_p0)
}
  0x28   :  { %34 = dma.hbm_to_vmem [thread:$0]  %s1247_s2, 384, %s32_s12, [#allocation5]  }
  0x29   :  { %s638_s18 = scalar_lea.vmem %s53_s14, 768  ;;  %p643_p2 = scmp.lt.s32.totalorder %s53_s14, %s53_s14 }
  0x2a   :  { %p639_p1 = scmp.ne.s32.totalorder %s53_s14, %s638_s18  ;;  %p644_p3 = scmp.lt.s32.totalorder %s638_s18, %s638_s18 }
  0x2c   :  { %p645_p4 = por %p644_p3, %p643_p2 }
  0x2e   :  { %p646_p5 = pnand %p645_p4, %p639_p1 }
  0x30   :  { %649 = shalt.err (!%p646_p5)
}
  0x31   :  { %58 = dma.hbm_to_vmem [thread:$0]  %s1249_s4, 768, %s53_s14, [#allocation8], %s722_s30, %s722_s30, %s723_s8  }
  0x32   :  { %712 = dma.done.wait [#allocation5], 384  }
  0x33   :  { %713 = vsyncadd [#allocation5], 4294966912 }
  0x34   :  { %714 = dma.done.wait [#allocation8], 1536  }
  0x35   :  { %715 = vsyncadd [#allocation8], 4294965760  ;;  %v84_v0 = vlaneseq  ;;  %s788_s2 = sld [smem:[#allocation3]]  ;;  %v800_v4 = vld [vmem:[#allocation4] sm:$0xff]  ;;  %v802_v5 = vld [vmem:[#allocation4 + $0x8] sm:$0xff]  ;;  %v726_v15 = vmov 0.0  }
  0x36   :  { %s792_s20 = sld [smem:[#allocation3 + $0x1]]  ;;  %v804_v6 = vld [vmem:[#allocation4 + $0x10] sm:$0xff]  ;;  %s727_s25 = smov [#allocation10]  }
  0x37   :  { %v790_v1 = vshrl.u32 %v84_v0, 7  ;;  %s795_s21 = sld [smem:[#allocation3 + $0x2]]  ;;  %s491_s26 = sshll.u32 %s727_s25, 4  ;;  %s492_s26 = int_to_ptr.vmem [resolvable:$true] %s491_s26 }
  0x38   :  { %s798_s4 = sld [smem:[#allocation3 + $0x3]]  ;;  %s650_s27 = scalar_lea.vmem %s492_s26, 768 }
  0x39   :  { %v96_v2 = vsub.s32 0, %v790_v1  ;;  %v130_v3 = vsub.s32 1, %v790_v1  ;;  %v164_v8 = vsub.s32 2, %v790_v1  ;;  %v198_v9 = vsub.s32 3, %v790_v1  ;;  %s848_s22 = sld [smem:[#allocation3 + $0x4]]  ;;  %p651_p6 = scmp.ne.s32.totalorder %s492_s26, %s650_s27 }
  0x3a   :  { %v232_v10 = vsub.s32 4, %v790_v1  ;;  %s871_s23 = sld [smem:[#allocation3 + $0x5]]  ;;  %v266_v45 = vsub.s32 5, %v790_v1  ;;  %p655_p7 = scmp.lt.s32.totalorder %s492_s26, %s492_s26 }
  0x3b   :  { %v91_v7 = vstv %s788_s2  ;;  %v818_v12 = vrot.slane %v800_v4, %v96_v2  ;;  %v821_v13 = vrot.slane %v802_v5, %v96_v2  ;;  %v824_v14 = vrot.slane %v804_v6, %v96_v2  ;;  %s900_s24 = sld [smem:[#allocation3 + $0x6]]  ;;  %p656_p8 = scmp.lt.s32.totalorder %s650_s27, %s650_s27 }
  0x3c   :  { %vm813_vm0 = vcmp.eq.s32.totalorder %v790_v1, %v91_v7  ;;  %v125_v17 = vstv %s792_s20  ;;  %v831_v18 = vrot.slane %v800_v4, %v130_v3  ;;  %v834_v19 = vrot.slane %v802_v5, %v130_v3  ;;  %s928_s1 = sld [smem:[#allocation3 + $0x7]] }
  0x3d   :  { %v531_v16 = vsel %vm813_vm0, 1.0, %v726_v15  ;;  %v106_v20 = vsel %vm813_vm0, %v818_v12, 0.0  ;;  %v107_v21 = vsel %vm813_vm0, %v821_v13, 0.0  ;;  %v108_v22 = vsel %vm813_vm0, %v824_v14, 0.0  ;;  %p657_p9 = por %p656_p8, %p655_p7 }
  0x3e   :  { %vm126_vm1 = vcmp.eq.s32.totalorder %v790_v1, %v125_v17  ;;  %v851_v23 = vrot.slane %v804_v6, %v130_v3  ;;  %v159_v30 = vstv %s795_s21  ;;  %v866_v33 = vrot.slane %v800_v4, %v164_v8 }
  0x3f   :  { %v140_v24 = vsel %vm126_vm1, %v831_v18, 0.0  ;;  %v141_v25 = vsel %vm126_vm1, %v834_v19, 0.0  ;;  %v534_v26 = vsel %vm126_vm1, 1.0, %v726_v15  ;;  %vm861_vm2 = vcmp.eq.s32.totalorder %v790_v1, %v159_v30  ;;  %p658_p10 = pnand %p657_p9, %p651_p6 }
  0x40   :  { %v146_v27 = vadd.f32 %v140_v24, %v106_v20  ;;  %v147_v28 = vadd.f32 %v141_v25, %v107_v21  ;;  %v156_v29 = vadd.f32 %v534_v26, %v531_v16  ;;  %v142_v31 = vsel %vm126_vm1, %v851_v23, 0.0 }
  0x41   :  { %v869_v34 = vrot.slane %v802_v5, %v164_v8  ;;  %v148_v35 = vadd.f32 %v142_v31, %v108_v22  ;;  %v874_v36 = vrot.slane %v804_v6, %v164_v8  ;;  %v537_v37 = vsel %vm861_vm2, 1.0, %v726_v15 }
  0x42   :  { %v193_v38 = vstv %s798_s4  ;;  %v174_v39 = vsel %vm861_vm2, %v866_v33, 0.0  ;;  %v190_v41 = vadd.f32 %v537_v37, %v156_v29  ;;  %v897_v44 = vrot.slane %v800_v4, %v198_v9 }
  0x43   :  { %v175_v40 = vsel %vm861_vm2, %v869_v34, 0.0  ;;  %vm889_vm3 = vcmp.eq.s32.totalorder %v790_v1, %v193_v38  ;;  %v176_v43 = vsel %vm861_vm2, %v874_v36, 0.0  ;;  %v180_v46 = vadd.f32 %v174_v39, %v146_v27 }
  0x44   :  { %v903_v47 = vrot.slane %v802_v5, %v198_v9  ;;  %v906_v48 = vrot.slane %v804_v6, %v198_v9  ;;  %v540_v49 = vsel %vm889_vm3, 1.0, %v726_v15  ;;  %v181_v50 = vadd.f32 %v175_v40, %v147_v28 }
  0x45   :  { %v182_v51 = vadd.f32 %v176_v43, %v148_v35  ;;  %v224_v52 = vadd.f32 %v540_v49, %v190_v41  ;;  %v227_v53 = vstv %s848_s22  ;;  %v208_v54 = vsel %vm889_vm3, %v897_v44, 0.0 }
  0x46   :  { %v209_v55 = vsel %vm889_vm3, %v903_v47, 0.0  ;;  %vm921_vm4 = vcmp.eq.s32.totalorder %v790_v1, %v227_v53  ;;  %v926_v57 = vrot.slane %v800_v4, %v232_v10  ;;  %v210_v58 = vsel %vm889_vm3, %v906_v48, 0.0 }
  0x47   :  { %v934_v59 = vrot.slane %v802_v5, %v232_v10  ;;  %v937_v60 = vrot.slane %v804_v6, %v232_v10  ;;  %v543_v61 = vsel %vm921_vm4, 1.0, %v726_v15  ;;  %v261_v62 = vstv %s871_s23 }
  0x48   :  { %v214_v63 = vadd.f32 %v208_v54, %v180_v46  ;;  %v215_v0 = vadd.f32 %v209_v55, %v181_v50  ;;  %v258_v2 = vadd.f32 %v543_v61, %v224_v52  ;;  %v300_v3 = vsub.s32 6, %v790_v1 }
  0x49   :  { %v216_v8 = vadd.f32 %v210_v58, %v182_v51  ;;  %v242_v9 = vsel %vm921_vm4, %v926_v57, 0.0  ;;  %vm950_vm5 = vcmp.eq.s32.totalorder %v790_v1, %v261_v62  ;;  %v955_v11 = vrot.slane %v800_v4, %v266_v45 }
  0x4a   :  { %v243_v16 = vsel %vm921_vm4, %v934_v59, 0.0  ;;  %v244_v20 = vsel %vm921_vm4, %v937_v60, 0.0  ;;  %v546_v21 = vsel %vm950_vm5, 1.0, %v726_v15  ;;  %v295_v22 = vstv %s900_s24 }
  0x4b   :  { %v968_v24 = vrot.slane %v802_v5, %v266_v45  ;;  %v971_v25 = vrot.slane %v804_v6, %v266_v45  ;;  %v292_v26 = vadd.f32 %v546_v21, %v258_v2  ;;  %vm976_vm6 = vcmp.eq.s32.totalorder %v790_v1, %v295_v22 }
  0x4c   :  { %v248_v28 = vadd.f32 %v242_v9, %v214_v63  ;;  %v334_v29 = vsub.s32 7, %v790_v1  ;;  %v249_v31 = vadd.f32 %v243_v16, %v215_v0  ;;  %v250_v32 = vadd.f32 %v244_v20, %v216_v8 }
  0x4d   :  { %v549_v35 = vsel %vm976_vm6, 1.0, %v726_v15  ;;  %v329_v37 = vstv %s928_s1  ;;  %v276_v39 = vsel %vm950_vm5, %v955_v11, 0.0  ;;  %v989_v40 = vrot.slane %v800_v4, %v300_v3 }
  0x4e   :  { %v326_v41 = vadd.f32 %v549_v35, %v292_v26  ;;  %vm994_vm7 = vcmp.eq.s32.totalorder %v790_v1, %v329_v37  ;;  %v277_v43 = vsel %vm950_vm5, %v968_v24, 0.0  ;;  %v278_v45 = vsel %vm950_vm5, %v971_v25, 0.0 }
  0x4f   :  { %v1005_v46 = vrot.slane %v802_v5, %v300_v3  ;;  %v1008_v49 = vadd.s32 8, %v790_v1  ;;  %v552_v50 = vsel %vm994_vm7, 1.0, %v726_v15  ;;  %v282_v51 = vadd.f32 %v276_v39, %v248_v28 }
  0x50   :  { %v1013_v52 = vadd.f32 %v552_v50, %v326_v41  ;;  %v283_v54 = vadd.f32 %v277_v43, %v249_v31  ;;  %v284_v55 = vadd.f32 %v278_v45, %v250_v32  ;;  %v1016_v56 = vrot.slane %v804_v6, %v300_v3  ;;  %v1118_v41 = vld [vmem:[#allocation7] sm:$0xff]  ;;  %v1120_v43 = vld [vmem:[#allocation7 + $0x8] sm:$0xff] }
  0x51   :  { %v310_v58 = vsel %vm976_vm6, %v989_v40, 0.0  ;;  %v311_v1 = vsel %vm976_vm6, %v1005_v46, 0.0  ;;  %v1025_v61 = vrot.slane %v800_v4, %v334_v29  ;;  %vm1031_vm9 = vcmp.eq.s32.totalorder %v1008_v49, %v91_v7 }
  0x52   :  { %vm362_vm8 = vcmp.gt.f32.partialorder %v1013_v52, 0.0  ;;  %v109_v2 = vsel %vm1031_vm9, %v818_v12, 0.0  ;;  %v110_v4 = vsel %vm1031_vm9, %v821_v13, 0.0  ;;  %v111_v3 = vsel %vm1031_vm9, %v824_v14, 0.0 }
  0x53   :  { %v364_v0 = vsel %vm362_vm8, %v1013_v52, 1.0  ;;  %v532_v7 = vsel %vm1031_vm9, 1.0, %v726_v15  ;;  %vm127_vm10 = vcmp.eq.s32.totalorder %v1008_v49, %v125_v17  ;;  %vm1056_vm11 = vcmp.eq.s32.totalorder %v1008_v49, %v159_v30 }
  0x54   :  { %570 = vrcp.f32 %v364_v0  ;;  %v143_v13 = vsel %vm127_vm10, %v831_v18, 0.0  ;;  %v144_v8 = vsel %vm127_vm10, %v834_v19, 0.0  ;;  %v145_v14 = vsel %vm127_vm10, %v851_v23, 0.0 }
  0x55   :  { %v535_v9 = vsel %vm127_vm10, 1.0, %v726_v15  ;;  %v312_v17 = vsel %vm976_vm6, %v1016_v56, 0.0  ;;  %v316_v10 = vadd.f32 %v310_v58, %v282_v51  ;;  %v1068_v30 = vrot.slane %v802_v5, %v334_v29 }
  0x56   :  { %v157_v16 = vadd.f32 %v535_v9, %v532_v7  ;;  %v1071_v20 = vrot.slane %v804_v6, %v334_v29  ;;  %v344_v18 = vsel %vm994_vm7, %v1025_v61, 0.0  ;;  %v149_v19 = vadd.f32 %v143_v13, %v109_v2 }
  0x57   :  { %v538_v23 = vsel %vm1056_vm11, 1.0, %v726_v15  ;;  %v150_v21 = vadd.f32 %v144_v8, %v110_v4  ;;  %v151_v26 = vadd.f32 %v145_v14, %v111_v3  ;;  %v177_v5 = vsel %vm1056_vm11, %v866_v33, 0.0 }
  0x58   :  { %v191_v27 = vadd.f32 %v538_v23, %v157_v16  ;;  %v178_v6 = vsel %vm1056_vm11, %v869_v34, 0.0  ;;  %v179_v28 = vsel %vm1056_vm11, %v874_v36, 0.0  ;;  %vm1091_vm12 = vcmp.eq.s32.totalorder %v1008_v49, %v193_v38 }
  0x59   :  { %vm1098_vm13 = vcmp.eq.s32.totalorder %v1008_v49, %v227_v53  ;;  %v317_v33 = vadd.f32 %v311_v1, %v283_v54  ;;  %v318_v32 = vadd.f32 %v312_v17, %v284_v55  ;;  %v345_v34 = vsel %vm994_vm7, %v1068_v30, 0.0  ;;  %v1125_v54 = vld [vmem:[#allocation7 + $0x10] sm:$0xff] }
  0x5a   :  { %v541_v36 = vsel %vm1091_vm12, 1.0, %v726_v15  ;;  %v346_v38 = vsel %vm994_vm7, %v1071_v20, 0.0  ;;  %v350_v35 = vadd.f32 %v344_v18, %v316_v10  ;;  %vm1114_vm14 = vcmp.eq.s32.totalorder %v1008_v49, %v261_v62 }
  0x5b   :  { %v225_v53 = vadd.f32 %v541_v36, %v191_v27  ;;  %v183_v45 = vadd.f32 %v177_v5, %v149_v19  ;;  %v184_v50 = vadd.f32 %v178_v6, %v150_v21  ;;  %v185_v51 = vadd.f32 %v179_v28, %v151_v26 }
  0x5c   :  { %v544_v42 = vsel %vm1098_vm13, 1.0, %v726_v15  ;;  %v211_v62 = vsel %vm1091_vm12, %v897_v44, 0.0  ;;  %v212_v55 = vsel %vm1091_vm12, %v903_v47, 0.0  ;;  %vm1136_vm15 = vcmp.eq.s32.totalorder %v1008_v49, %v295_v22 }
  0x5d   :  { %v259_v58 = vadd.f32 %v544_v42, %v225_v53  ;;  %v351_v63 = vadd.f32 %v345_v34, %v317_v33  ;;  %v352_v0 = vadd.f32 %v346_v38, %v318_v32  ;;  %v213_v2 = vsel %vm1091_vm12, %v906_v48, 0.0 }
  0x5e   :  { %v547_v44 = vsel %vm1114_vm14, 1.0, %v726_v15  ;;  %v374_v47 = vmul.f32 0.9, %v1118_v41  ;;  %v375_v4 = vmul.f32 0.9, %v1120_v43  ;;  %v217_v7 = vadd.f32 %v211_v62, %v183_v45 }
  0x5f   :  { %v293_v3 = vadd.f32 %v547_v44, %v259_v58  ;;  %v376_v22 = vmul.f32 0.9, %v1125_v54  ;;  %v218_v12 = vadd.f32 %v212_v55, %v184_v50  ;;  %v550_v13 = vsel %vm1136_vm15, 1.0, %v726_v15  ;;  %v75_v58 = vld [vmem:[#allocation7 + $0x18] sm:$0xff] }
  0x60   :  { %v219_v48 = vadd.f32 %v213_v2, %v185_v51  ;;  %v245_v14 = vsel %vm1098_vm13, %v926_v57, 0.0  ;;  %v246_v9 = vsel %vm1098_vm13, %v934_v59, 0.0  ;;  %vm1161_vm0 = vcmp.eq.s32.totalorder %v1008_v49, %v329_v37  ;;  %v77_v2 = vld [vmem:[#allocation7 + $0x28] sm:$0xff] }
  0x61   :  { %v571_v8 = vpop.eup %570  ;;  %v327_v17 = vadd.f32 %v550_v13, %v293_v3  ;;  %v247_v23 = vsel %vm1098_vm13, %v937_v60, 0.0  ;;  %v553_v57 = vsel %vm1161_vm0, 1.0, %v726_v15  ;;  %v251_v5 = vadd.f32 %v245_v14, %v217_v7 }
  0x62   :  { %v367_v10 = vmul.f32 %v571_v8, %v350_v35  ;;  %v368_v16 = vmul.f32 %v571_v8, %v351_v63  ;;  %v369_v18 = vmul.f32 %v571_v8, %v352_v0  ;;  %v252_v27 = vadd.f32 %v246_v9, %v218_v12  ;;  %v76_v63 = vld [vmem:[#allocation7 + $0x20] sm:$0xff] }
  0x63   :  { %v1171_v6 = vadd.f32 %v553_v57, %v327_v17  ;;  %v253_v29 = vadd.f32 %v247_v23, %v219_v48  ;;  %v279_v31 = vsel %vm1114_vm14, %v955_v11, 0.0  ;;  %v280_v60 = vsel %vm1114_vm14, %v968_v24, 0.0  ;;  %v78_v57 = vld [vmem:[#allocation9] sm:$0xff] }
  0x64   :  { %v380_v21 = vmul.f32 0.1, %v367_v10  ;;  %v381_v59 = vmul.f32 0.1, %v368_v16  ;;  %v382_v26 = vmul.f32 0.1, %v369_v18  ;;  %v285_v11 = vadd.f32 %v279_v31, %v251_v5 }
  0x65   :  { %v281_v33 = vsel %vm1114_vm14, %v971_v25, 0.0  ;;  %vm363_vm1 = vcmp.gt.f32.partialorder %v1171_v6, 0.0  ;;  %v286_v53 = vadd.f32 %v280_v60, %v252_v27  ;;  %v313_v24 = vsel %vm1136_vm15, %v989_v40, 0.0 }
  0x66   :  { %v386_v28 = vadd.f32 %v380_v21, %v374_v47  ;;  %v387_v37 = vadd.f32 %v381_v59, %v375_v4  ;;  %v388_v49 = vadd.f32 %v382_v26, %v376_v22  ;;  %v365_v38 = vsel %vm363_vm1, %v1171_v6, 1.0  ;;  %v79_v21 = vld [vmem:[#allocation9 + $0x8] sm:$0xff]  ;;  %v80_v59 = vld [vmem:[#allocation9 + $0x10] sm:$0xff] }
  0x67   :  { %572 = vrcp.f32 %v365_v38  ;;  %v287_v45 = vadd.f32 %v281_v33, %v253_v29  ;;  %v314_v25 = vsel %vm1136_vm15, %v1005_v46, 0.0  ;;  %v315_v39 = vsel %vm1136_vm15, %v1016_v56, 0.0 }
  0x68   :  { %v392_v32 = vmul.f32 %v386_v28, %v386_v28  ;;  %v393_v34 = vmul.f32 %v387_v37, %v387_v37  ;;  %v394_v36 = vmul.f32 %v388_v49, %v388_v49  ;;  %v319_v51 = vadd.f32 %v313_v24, %v285_v11  ;;  %v81_v11 = vld [vmem:[#allocation9 + $0x18] sm:$0xff] }
  0x69   :  { %v320_v42 = vadd.f32 %v314_v25, %v286_v53  ;;  %v321_v62 = vadd.f32 %v315_v39, %v287_v45  ;;  %v347_v55 = vsel %vm1161_vm0, %v1025_v61, 0.0  ;;  %v348_v40 = vsel %vm1161_vm0, %v1068_v30, 0.0  ;;  %v82_v53 = vld [vmem:[#allocation9 + $0x20] sm:$0xff]  ;;  %v83_v45 = vld [vmem:[#allocation9 + $0x28] sm:$0xff] }
  0x6a   :  { %v398_v35 = vadd.f32 %v393_v34, %v392_v32  ;;  %v349_v46 = vsel %vm1161_vm0, %v1071_v20, 0.0  ;;  %v353_v1 = vadd.f32 %v347_v55, %v319_v51  ;;  %v377_v47 = vmul.f32 0.9, %v75_v58 }
  0x6b   :  { %v354_v56 = vadd.f32 %v348_v40, %v320_v42  ;;  %v355_v0 = vadd.f32 %v349_v46, %v321_v62  ;;  %v378_v4 = vmul.f32 0.9, %v76_v63  ;;  %v379_v7 = vmul.f32 0.9, %v77_v2 }
  0x6c   :  { %v399_v50 = vadd.f32 %v398_v35, %v394_v36  ;;  %vm454_vm2 = vcmask 7168  }
  0x6e   :  { %400 = vadd.xlane.f32.xlu0 %v399_v50 }
  0x74   :  { %v573_v44 = vpop.eup %572 }
  0x75   :  { %v371_v3 = vmul.f32 %v573_v44, %v353_v1  ;;  %v372_v22 = vmul.f32 %v573_v44, %v354_v56  ;;  %v373_v61 = vmul.f32 %v573_v44, %v355_v0  ;;  %v554_v1 = vsel %vm362_vm8, 1.0, %v726_v15 }
  0x76   :  { %v472_v0 = vsel %vm454_vm2, %v554_v1, 0.0 }
  0x77   :  { %v383_v12 = vmul.f32 0.1, %v371_v3  ;;  %v384_v13 = vmul.f32 0.1, %v372_v22  ;;  %v385_v30 = vmul.f32 0.1, %v373_v61 }
  0x79   :  { %v389_v8 = vadd.f32 %v383_v12, %v377_v47  ;;  %v390_v48 = vadd.f32 %v384_v13, %v378_v4  ;;  %v391_v14 = vadd.f32 %v385_v30, %v379_v7 }
  0x7b   :  { %v395_v20 = vmul.f32 %v389_v8, %v389_v8  ;;  %v396_v9 = vmul.f32 %v390_v48, %v390_v48  ;;  %v397_v17 = vmul.f32 %v391_v14, %v391_v14 }
  0x7d   :  { %v402_v10 = vadd.f32 %v396_v9, %v395_v20 }
  0x7f   :  { %v403_v16 = vadd.f32 %v402_v10, %v397_v17 }
  0x81   :  { %404 = vadd.xlane.f32.xlu0 %v403_v16 }
  0xf7   :  { %v401_v18 = vpop.xlane.xlu0 %400 }
  0xf8   :  { %v406_v19 = vmax.f32 %v401_v18, 1e-30 }
  0xfa   :  { %574 = vrsqrt.f32 %v406_v19 }
 0x107   :  { %v575_v23 = vpop.eup %574 }
 0x108   :  { %v410_v26 = vmul.f32 %v575_v23, %v386_v28  ;;  %v411_v5 = vmul.f32 %v575_v23, %v387_v37  ;;  %v412_v27 = vmul.f32 %v575_v23, %v388_v49 }
 0x10a   :  { %v420_v29 = vsel %vm362_vm8, %v410_v26, %v1118_v41  ;;  %v421_v31 = vsel %vm362_vm8, %v411_v5, %v1120_v43  ;;  %v422_v60 = vsel %vm362_vm8, %v412_v27, %v1125_v54  ;;  %v405_v28 = vpop.xlane.xlu0 %404 }
 0x10b   :  { %427 = vst [vmem:[#allocation10 + $0x8] sm:$0xff] %v421_v31  ;;  %428 = vst [vmem:[#allocation10 + $0x10] sm:$0xff] %v422_v60  ;;  %v432_v33 = vsub.f32 %v420_v29, %v78_v57  ;;  %v433_v32 = vsub.f32 %v421_v31, %v79_v21  ;;  %v434_v34 = vsub.f32 %v422_v60, %v80_v59  ;;  %v407_v37 = vmax.f32 %v405_v28, 1e-30 }
 0x10c   :  { %426 = vst [vmem:[#allocation10] sm:$0xff] %v420_v29 }
 0x10d   :  { %v438_v49 = vmul.f32 %v432_v33, %v432_v33  ;;  %v439_v36 = vmul.f32 %v433_v32, %v433_v32  ;;  %576 = vrsqrt.f32 %v407_v37  ;;  %v440_v41 = vmul.f32 %v434_v34, %v434_v34 }
 0x10f   :  { %v444_v38 = vadd.f32 %v439_v36, %v438_v49 }
 0x111   :  { %v445_v35 = vadd.f32 %v444_v38, %v440_v41 }
 0x113   :  { %446 = vadd.xlane.f32.xlu1 %v445_v35 }
 0x11a   :  { %v577_v43 = vpop.eup %576 }
 0x11b   :  { %v413_v54 = vmul.f32 %v577_v43, %v389_v8  ;;  %v414_v50 = vmul.f32 %v577_v43, %v390_v48  ;;  %v415_v24 = vmul.f32 %v577_v43, %v391_v14 }
 0x11d   :  { %v423_v25 = vsel %vm363_vm1, %v413_v54, %v75_v58  ;;  %v424_v39 = vsel %vm363_vm1, %v414_v50, %v76_v63  ;;  %v425_v51 = vsel %vm363_vm1, %v415_v24, %v77_v2  ;;  %v555_v58 = vsel %vm363_vm1, 1.0, %v726_v15 }
 0x11e   :  { %430 = vst [vmem:[#allocation10 + $0x20] sm:$0xff] %v424_v39  ;;  %431 = vst [vmem:[#allocation10 + $0x28] sm:$0xff] %v425_v51  ;;  %v435_v42 = vsub.f32 %v423_v25, %v81_v11  ;;  %v436_v62 = vsub.f32 %v424_v39, %v82_v53  ;;  %v437_v55 = vsub.f32 %v425_v51, %v83_v45  ;;  %v473_v2 = vsel %vm454_vm2, %v555_v58, 0.0 }
 0x11f   :  { %429 = vst [vmem:[#allocation10 + $0x18] sm:$0xff] %v423_v25  ;;  %v474_v47 = vadd.f32 %v473_v2, %v472_v0 }
 0x120   :  { %v441_v40 = vmul.f32 %v435_v42, %v435_v42  ;;  %v442_v46 = vmul.f32 %v436_v62, %v436_v62  ;;  %v443_v63 = vmul.f32 %v437_v55, %v437_v55 }
 0x122   :  { %v448_v56 = vadd.f32 %v442_v46, %v441_v40 }
 0x124   :  { %v449_v44 = vadd.f32 %v448_v56, %v443_v63 }
 0x126   :  { %450 = vadd.xlane.f32.xlu1 %v449_v44 }
 0x12a   :  { %475 = vadd.xlane.f32.xlu1 %v474_v47 }
 0x19c   :  { %v447_v4 = vpop.xlane.xlu1 %446 }
 0x19d   :  { %v452_v3 = vsel %vm362_vm8, %v447_v4, 0.0 }
 0x19e   :  { %v455_v15 = vsel %vm454_vm2, %v452_v3, 0.0 }
 0x1af   :  { %v451_v22 = vpop.xlane.xlu1 %450 }
 0x1b0   :  { %v453_v61 = vsel %vm363_vm1, %v451_v22, 0.0 }
 0x1b1   :  { %v456_v7 = vsel %vm454_vm2, %v453_v61, 0.0 }
 0x1b2   :  { %v457_v12 = vadd.f32 %v456_v7, %v455_v15 }
 0x1b4   :  { %458 = vadd.xlane.f32.xlu0 %v457_v12 }
 0x1b5   :  { %661 = shalt.err (!%p658_p10)
}
 0x1b6   :  { %497 = dma.vmem_to_hbm [thread:$0]  %s492_s26, 768, %s1250_s5, [#allocation6], %s722_s30, %s722_s30, %s723_s8   ;;  %v476_v52 = vpop.xlane.xlu1 %475  ;;  %vm468_vm3 = vcmask 0  }
 0x1b7   :  { %v477_v6 = vrot.slane %v476_v52, 4  ;;  %s728_s0 = smov [#allocation11]   ;;  %s729_s10 = smov [#allocation13]  }
 0x1b8   :  { %s504_s9 = sshll.u32 %s728_s0, 4  ;;  %s514_s5 = sshll.u32 %s729_s10, 4  ;;  %s505_s9 = int_to_ptr.vmem [resolvable:$true] %s504_s9  ;;  %s515_s5 = int_to_ptr.vmem [resolvable:$true] %s514_s5 }
 0x1b9   :  { %v478_v13 = vadd.f32 %v477_v6, %v476_v52  ;;  %s670_s11 = scalar_lea.vmem %s505_s9, 16  ;;  %s674_s12 = scalar_lea.vmem %s505_s9, 32 }
 0x1ba   :  { %p671_p11 = scmp.ne.s32.totalorder %s505_s9, %s670_s11  ;;  %p675_p12 = scmp.lt.s32.totalorder %s505_s9, %s505_s9 }
 0x1bb   :  { %v479_v30 = vrot.slane %v478_v13, 2  ;;  %p676_p13 = scmp.lt.s32.totalorder %s674_s12, %s670_s11 }
 0x1bd   :  { %v480_v20 = vadd.f32 %v479_v30, %v478_v13  ;;  %p677_p0 = por %p676_p13, %p675_p12 }
 0x1bf   :  { %v481_v10 = vrot.slane %v480_v20, 1  ;;  %p678_p1 = pnand %p677_p0, %p671_p11 }
 0x1c1   :  { %v482_v19 = vadd.f32 %v481_v10, %v480_v20 }
 0x23d   :  { %v459_v8 = vpop.xlane.xlu0 %458 }
 0x23e   :  { %v460_v48 = vrot.slane %v459_v8, 4 }
 0x240   :  { %v461_v14 = vadd.f32 %v460_v48, %v459_v8 }
 0x242   :  { %v462_v9 = vrot.slane %v461_v14, 2 }
 0x244   :  { %v463_v17 = vadd.f32 %v462_v9, %v461_v14 }
 0x246   :  { %v464_v16 = vrot.slane %v463_v17, 1 }
 0x248   :  { %v465_v18 = vadd.f32 %v464_v16, %v463_v17 }
 0x24a   :  { %556 = vpush %v465_v18 }
 0x24b   :  { %558 = vpush %v482_v19 }
 0x27b   :  { %s557_s30 = spop %556 }
 0x27c   :  { %v467_v23 = vstv %s557_s30  ;;  %s559_s8 = spop %558 }
 0x27d   :  { %v484_v57 = vstv %s559_s8  ;;  %469 = vst.msk [vmem:[#allocation11] sm:$0x1] %vm468_vm3, %v467_v23 }
 0x27e   :  { %485 = vst.msk [vmem:[#allocation13] sm:$0x1] %vm468_vm3, %v484_v57 }
 0x27f   :  { %681 = shalt.err (!%p678_p1)
}
 0x280   :  { %507 = dma.vmem_to_hbm [thread:$0]  %s505_s9, 16, %s1251_s6, [#allocation12]  }
 0x281   :  { %s690_s15 = scalar_lea.vmem %s515_s5, 16  ;;  %s694_s16 = scalar_lea.vmem %s515_s5, 32 }
 0x282   :  { %p691_p2 = scmp.ne.s32.totalorder %s515_s5, %s690_s15  ;;  %p695_p3 = scmp.lt.s32.totalorder %s515_s5, %s515_s5 }
 0x283   :  { %p696_p4 = scmp.lt.s32.totalorder %s694_s16, %s690_s15 }
 0x285   :  { %p697_p5 = por %p696_p4, %p695_p3 }
 0x287   :  { %p698_p6 = pnand %p697_p5, %p691_p2 }
 0x289   :  { %701 = shalt.err (!%p698_p6)
}
 0x28a   :  { %517 = dma.vmem_to_hbm [thread:$0]  %s515_s5, 16, %s1252_s7, [#allocation12]  }
 0x28b   :  { %716 = dma.done.wait [#allocation6], 768  }
 0x28c   :  { %717 = vsyncadd [#allocation6], 4294966528 }
 0x28d   :  { %718 = dma.done.wait [#allocation12], 32  }
 0x28e   :  { %719 = vsyncadd [#allocation12], 4294967264 }
 0x28f   :  { %527 = vsyncpa [#allocation5], 1 }
 0x290   :  { %528 = vsyncpa [#allocation8], 1 }
 0x291   :  { %529 = vsyncpa [#allocation6], 1 }
 0x292   :  { %530 = vsyncpa [#allocation12], 1 }

</bundles_post_ra>
